<compile_context>
chip_gen: v6e
topology: v6e:2x2x1
jax: 0.10.0
libtpu: 0.0.40
codegen_flags: <defaults>
</compile_context>

<pallas_src>
import jax
import jax.numpy as jnp
from jax.experimental import pallas as pl
from jax.experimental.pallas import tpu as pltpu

_LANE = 128                           # rows-per-tile granularity
_TM_MAX = 16384                       # hard cap on rows per tile
_VMEM_TILE_BUDGET = 8 * 1024 * 1024   # bytes for the pipelined x/out tiles
_SMALL_M = 512                        # below this, skip Pallas (fast path)


def _round_up(n, m):
    return ((n + m - 1) // m) * m


def _choose_tm(m_rows, dim_ca, itemsize):
    """Rows per tile from a VMEM byte budget (x + out, double-buffered)."""
    bytes_per_row = dim_ca * itemsize * 4          # 2 arrays x 2 buffers
    cap = (_VMEM_TILE_BUDGET // bytes_per_row) // _LANE * _LANE
    cap = max(_LANE, min(cap, _TM_MAX))
    # Keep at least 2 grid tiles for large M so the "parallel" grid axis can
    # be sharded across both TensorCores on v7x (harmless on v5e/v6e).
    half = _round_up(pl.cdiv(m_rows, 2), _LANE)
    return min(cap, max(half, _LANE))


def _ca_kernel(x_ref, w1t_ref, b1_ref, w2t_ref, b2_ref, o_ref):
    # Natural layout, rows on sublanes:
    #   x_ref : (TM, D)    w1t_ref: (D, H)   b1_ref: (1, H)
    #   w2t_ref: (H, D)    b2_ref : (1, D)   o_ref : (TM, D)
    x = x_ref[...]
    h = jnp.dot(x, w1t_ref[...], preferred_element_type=jnp.float32) + b1_ref[...]
    h = jnp.maximum(h, 0.0)                       # ReLU on the VPU
    out = jnp.dot(h, w2t_ref[...], preferred_element_type=jnp.float32) + b2_ref[...]
    o_ref[...] = out.astype(o_ref.dtype)


def ca_layer_pallas(x, w1, b1, w2, b2):
    """CALayer forward via the Pallas kernel.

    x  : (..., dim_ca)
    w1 : (hidden, dim_ca)   (PyTorch Linear weight layout: (out, in))
    b1 : (hidden,)
    w2 : (dim_ca, hidden)
    b2 : (dim_ca,)
    """
    orig_shape = x.shape
    dim_ca = orig_shape[-1]
    hidden = w1.shape[0]

    x2d = x.reshape(-1, dim_ca)                   # (M, D) -- natural layout, no copy
    M = x2d.shape[0]
    itemsize = x2d.dtype.itemsize

    tm = _choose_tm(M, dim_ca, itemsize)
    grid = (pl.cdiv(M, tm),)                      # ragged last block handled by Pallas

    # Tiny weight transposes (32x8) so the kernel does plain row-major matmuls.
    w1t = w1.T                                    # (D, H)
    w2t = w2.T                                    # (H, D)
    b1_c = b1.reshape(1, hidden)
    b2_c = b2.reshape(1, dim_ca)

    x_bytes = M * dim_ca * itemsize
    w_bytes = sum(int(a.size) * a.dtype.itemsize for a in (w1, b1, w2, b2))
    cost = pl.CostEstimate(
        flops=4 * M * dim_ca * hidden,            # two matmuls
        transcendentals=0,
        bytes_accessed=2 * x_bytes + w_bytes,     # read x + write out + weights
    )

    out2d = pl.pallas_call(
        _ca_kernel,
        out_shape=jax.ShapeDtypeStruct((M, dim_ca), x.dtype),
        grid_spec=pltpu.PrefetchScalarGridSpec(
            num_scalar_prefetch=0,
            grid=grid,
            in_specs=[
                pl.BlockSpec((tm, dim_ca), lambda i: (i, 0)),       # x tile
                pl.BlockSpec((dim_ca, hidden), lambda i: (0, 0)),   # w1.T (resident)
                pl.BlockSpec((1, hidden), lambda i: (0, 0)),        # b1   (resident)
                pl.BlockSpec((hidden, dim_ca), lambda i: (0, 0)),   # w2.T (resident)
                pl.BlockSpec((1, dim_ca), lambda i: (0, 0)),        # b2   (resident)
            ],
            out_specs=pl.BlockSpec((tm, dim_ca), lambda i: (i, 0)),
        ),
        compiler_params=pltpu.CompilerParams(
            dimension_semantics=("parallel",),    # rows independent; dual-TC on v7x
            vmem_limit_bytes=32 * 1024 * 1024,    # safe on v7x's 64 MiB physical VMEM
        ),
        cost_estimate=cost,
    )(x2d, w1t, b1_c, w2t, b2_c)

    return out2d.reshape(orig_shape)


def ca_layer_ref(x, w1, b1, w2, b2):
    """Pure-JAX reference matching PyTorch nn.Sequential(Linear, ReLU, Linear)."""
    h = jnp.maximum(x @ w1.T + b1, 0.0)
    return h @ w2.T + b2


def ca_layer(x, w1, b1, w2, b2):
    """Dispatcher: XLA fused matmul for tiny row counts, Pallas otherwise."""
    m_rows = 1
    for d in x.shape[:-1]:
        m_rows *= d
    if m_rows < _SMALL_M:
        return ca_layer_ref(x, w1, b1, w2, b2)
    return ca_layer_pallas(x, w1, b1, w2, b2)


if __name__ == "__main__":
    key = jax.random.PRNGKey(0)

    dim_ca = 32
    reduction_ca = 4
    hidden = dim_ca // reduction_ca

    k_x, k_w1, k_b1, k_w2, k_b2, k_x2 = jax.random.split(key, 6)

    # Deterministic synthetic parameters (PyTorch Linear layout: (out, in)).
    w1 = jax.random.normal(k_w1, (hidden, dim_ca), dtype=jnp.float32) * 0.1
    b1 = jax.random.normal(k_b1, (hidden,), dtype=jnp.float32) * 0.1
    w2 = jax.random.normal(k_w2, (dim_ca, hidden), dtype=jnp.float32) * 0.1
    b2 = jax.random.normal(k_b2, (dim_ca,), dtype=jnp.float32) * 0.1

    # Small, module-consistent input: (batch=2, seq=8, dim_ca=32).
    x = jax.random.normal(k_x, (2, 8, dim_ca), dtype=jnp.float32)
    out = jax.block_until_ready(ca_layer_pallas(x, w1, b1, w2, b2))
    ref = ca_layer_ref(x, w1, b1, w2, b2)
    assert out.shape == x.shape
    assert jnp.allclose(out, ref, atol=1e-5, rtol=1e-5), "mismatch (small) vs reference"

    # Slightly larger input exercising a 2-tile grid with a ragged last block.
    x_big = jax.random.normal(k_x2, (3, 700, dim_ca), dtype=jnp.float32)
    out_big = jax.block_until_ready(ca_layer_pallas(x_big, w1, b1, w2, b2))
    ref_big = ca_layer_ref(x_big, w1, b1, w2, b2)
    assert out_big.shape == x_big.shape
    assert jnp.allclose(out_big, ref_big, atol=1e-5, rtol=1e-5), "mismatch (big) vs reference"

    print("KERNEL_OK")
</pallas_src>

<mosaic_0001>
module attributes {stable_mosaic.version = 11 : i64} {
  func.func @_ca_kernel(%arg0: i32, %arg1: memref<128x32xf32, #tpu.memory_space<vmem>>, %arg2: memref<32x8xf32, #tpu.memory_space<vmem>>, %arg3: memref<1x8xf32, #tpu.memory_space<vmem>>, %arg4: memref<8x32xf32, #tpu.memory_space<vmem>>, %arg5: memref<1x32xf32, #tpu.memory_space<vmem>>, %arg6: memref<128x32xf32, #tpu.memory_space<vmem>>) attributes {dimension_semantics = [#tpu.dimension_semantics<parallel>], iteration_bounds = array<i64: 1>, scalar_prefetch = 0 : i64, scratch_operands = 0 : i64, tpu.core_type = #tpu.core_type<tc>, window_params = [{transform_indices = @transform_0, window_bounds = array<i64: 128, 32>}, {pipeline_mode = #tpu.pipeline_mode<synchronous>, transform_indices = @transform_1, window_bounds = array<i64: 32, 8>}, {pipeline_mode = #tpu.pipeline_mode<synchronous>, transform_indices = @transform_2, window_bounds = array<i64: 1, 8>}, {pipeline_mode = #tpu.pipeline_mode<synchronous>, transform_indices = @transform_3, window_bounds = array<i64: 8, 32>}, {pipeline_mode = #tpu.pipeline_mode<synchronous>, transform_indices = @transform_4, window_bounds = array<i64: 1, 32>}, {transform_indices = @transform_5, window_bounds = array<i64: 128, 32>}]} {
    %c0 = arith.constant 0 : index
    %c0_0 = arith.constant 0 : index
    %0 = vector.load %arg1[%c0, %c0_0] : memref<128x32xf32, #tpu.memory_space<vmem>>, vector<128x32xf32>
    %c0_1 = arith.constant 0 : index
    %c0_2 = arith.constant 0 : index
    %1 = vector.load %arg2[%c0_1, %c0_2] : memref<32x8xf32, #tpu.memory_space<vmem>>, vector<32x8xf32>
    %cst = arith.constant dense<0.000000e+00> : vector<128x8xf32>
    %2 = tpu.matmul %0, %1, %cst {dimension_numbers = #tpu.dot_dimension_numbers<[1], [0], [0], [1], [0, 0, 1, 1], [], []>} : vector<128x32xf32>, vector<32x8xf32>, vector<128x8xf32> -> vector<128x8xf32>
    %c0_3 = arith.constant 0 : index
    %c0_4 = arith.constant 0 : index
    %3 = vector.load %arg3[%c0_3, %c0_4] : memref<1x8xf32, #tpu.memory_space<vmem>>, vector<1x8xf32>
    %4 = vector.broadcast %3 : vector<1x8xf32> to vector<128x8xf32>
    %5 = arith.addf %2, %4 : vector<128x8xf32>
    %cst_5 = arith.constant 0.000000e+00 : f32
    %6 = vector.broadcast %cst_5 : f32 to vector<128x8xf32>
    %7 = arith.maximumf %5, %6 : vector<128x8xf32>
    %c0_6 = arith.constant 0 : index
    %c0_7 = arith.constant 0 : index
    %8 = vector.load %arg4[%c0_6, %c0_7] : memref<8x32xf32, #tpu.memory_space<vmem>>, vector<8x32xf32>
    %cst_8 = arith.constant dense<0.000000e+00> : vector<128x32xf32>
    %9 = tpu.matmul %7, %8, %cst_8 {dimension_numbers = #tpu.dot_dimension_numbers<[1], [0], [0], [1], [0, 0, 1, 1], [], []>} : vector<128x8xf32>, vector<8x32xf32>, vector<128x32xf32> -> vector<128x32xf32>
    %c0_9 = arith.constant 0 : index
    %c0_10 = arith.constant 0 : index
    %10 = vector.load %arg5[%c0_9, %c0_10] : memref<1x32xf32, #tpu.memory_space<vmem>>, vector<1x32xf32>
    %11 = vector.broadcast %10 : vector<1x32xf32> to vector<128x32xf32>
    %12 = arith.addf %9, %11 : vector<128x32xf32>
    %c0_11 = arith.constant 0 : index
    %c0_12 = arith.constant 0 : index
    %13 = vector.load %arg6[%c0_11, %c0_12] : memref<128x32xf32, #tpu.memory_space<vmem>>, vector<128x32xf32>
    tpu.vector_store %arg6[%c0_11, %c0_12], %12 {strides = array<i32>} : memref<128x32xf32, #tpu.memory_space<vmem>>, vector<128x32xf32>,
    return
  }
  func.func @transform_0(%arg0: i32) -> (i32, i32) {
    %c0_i32 = arith.constant 0 : i32
    %c0_i32_0 = arith.constant 0 : i32
    return %arg0, %c0_i32 : i32, i32
  }
  func.func @transform_1(%arg0: i32) -> (i32, i32) {
    %c0_i32 = arith.constant 0 : i32
    %c0_i32_0 = arith.constant 0 : i32
    %c0_i32_1 = arith.constant 0 : i32
    return %c0_i32, %c0_i32_0 : i32, i32
  }
  func.func @transform_2(%arg0: i32) -> (i32, i32) {
    %c0_i32 = arith.constant 0 : i32
    %c0_i32_0 = arith.constant 0 : i32
    %c0_i32_1 = arith.constant 0 : i32
    return %c0_i32, %c0_i32_0 : i32, i32
  }
  func.func @transform_3(%arg0: i32) -> (i32, i32) {
    %c0_i32 = arith.constant 0 : i32
    %c0_i32_0 = arith.constant 0 : i32
    %c0_i32_1 = arith.constant 0 : i32
    return %c0_i32, %c0_i32_0 : i32, i32
  }
  func.func @transform_4(%arg0: i32) -> (i32, i32) {
    %c0_i32 = arith.constant 0 : i32
    %c0_i32_0 = arith.constant 0 : i32
    %c0_i32_1 = arith.constant 0 : i32
    return %c0_i32, %c0_i32_0 : i32, i32
  }
  func.func @transform_5(%arg0: i32) -> (i32, i32) {
    %c0_i32 = arith.constant 0 : i32
    %c0_i32_0 = arith.constant 0 : i32
    return %arg0, %c0_i32 : i32, i32
  }
}

</mosaic_0001>

<bundles_post_ra>
// kernel: tpu_custom_call.1
= control target key start
LH: loop header
LB: loop body
LE: loop exit
PB: predicated region body
PF: predicated region fallthrough
CT: control target
= control target key end

     0   :  { %10 = vsyncpa [#allocation3], 0  ;;  %vm48_vm0 = vcmask 261120   ;;  %vm266_vm1 = vcmask 64512   ;;  %s799_s0 = inlined_call_operand.vmem [shape: f32[16,32], index: 0, kind: input, shape index: {}]   ;;  %s800_s1 = inlined_call_operand.vmem [shape: f32[32,8], index: 1, kind: input, shape index: {}]   ;;  %s801_s2 = inlined_call_operand.vmem [shape: f32[1,8], index: 2, kind: input, shape index: {}]   ;;  %s802_s3 = inlined_call_operand.vmem [shape: f32[8,32], index: 3, kind: input, shape index: {}]   ;;  %s803_s4 = inlined_call_operand.vmem [shape: f32[1,32], index: 4, kind: input, shape index: {}]   ;;  %s804_s5 = inlined_call_operand.hbm [shape: f32[16,32], index: 5, kind: output, shape index: {}]  }
   0x1   :  { %v40_v0 = vld [vmem:[%s800_s1 + $0x18] sm:$0xff]  ;;  %v39_v1 = vld [vmem:[%s800_s1 + $0x10] sm:$0xff]  ;;  %v21_v2 = vld [vmem:[%s799_s0] sm:$0xff] }
   0x2   :  { %563 = vmatprep.subr.mxu0 %v40_v0  ;;  %v38_v3 = vld [vmem:[%s800_s1 + $0x8] sm:$0xff]  ;;  %571 = vmatprep.mubr.msk.f32.mxu0 %vm48_vm0, %v21_v2  ;;  %v37_v4 = vld [vmem:[%s800_s1] sm:$0xff]  ;;  %v23_v6 = vld [vmem:[%s799_s0 + $0x10] sm:$0xff] }
   0x3   :  { %564 = vmatpush3.msra.mxu0 %v40_v0  ;;  %v22_v5 = vld [vmem:[%s799_s0 + $0x8] sm:$0xff]  ;;  %v24_v7 = vld [vmem:[%s799_s0 + $0x18] sm:$0xff]  ;;  %v25_v8 = vld [vmem:[%s799_s0 + $0x20] sm:$0xff] }
   0x4   :  { %565 = vmatprep.subr.mxu0 %v39_v1  ;;  %v26_v9 = vld [vmem:[%s799_s0 + $0x28] sm:$0xff]  ;;  %v27_v10 = vld [vmem:[%s799_s0 + $0x30] sm:$0xff]  ;;  %v28_v11 = vld [vmem:[%s799_s0 + $0x38] sm:$0xff] }
   0x5   :  { %566 = vmatpush3.msra.mxu0 %v39_v1  ;;  %v29_v12 = vld [vmem:[%s799_s0 + $0x40] sm:$0xff]  ;;  %v30_v13 = vld [vmem:[%s799_s0 + $0x48] sm:$0xff]  ;;  %v31_v14 = vld [vmem:[%s799_s0 + $0x50] sm:$0xff] }
   0x6   :  { %567 = vmatprep.subr.mxu0 %v38_v3  ;;  %v32_v15 = vld [vmem:[%s799_s0 + $0x58] sm:$0xff]  ;;  %v33_v16 = vld [vmem:[%s799_s0 + $0x60] sm:$0xff]  ;;  %v34_v17 = vld [vmem:[%s799_s0 + $0x68] sm:$0xff] }
   0x7   :  { %568 = vmatpush3.msra.mxu0 %v38_v3  ;;  %v35_v18 = vld [vmem:[%s799_s0 + $0x70] sm:$0xff]  ;;  %v36_v19 = vld [vmem:[%s799_s0 + $0x78] sm:$0xff]  ;;  %v258_v20 = vld [vmem:[%s802_s3] sm:$0xff] }
   0x8   :  { %569 = vmatprep.subr.mxu0 %v37_v4  ;;  %595 = vmatprep.subr.mxu1 %v258_v20  ;;  %v492_v21 = vld [vmem:[%s801_s2] ss:$0 sm:$0xff] }
   0x9   :  { %570 = vmatpush3.msra.mxu0 %v37_v4  ;;  %596 = vmatpush3.msra.mxu1 %v258_v20 }
   0xa   :  { %572 = vmatmul.mubr.msk.f32.vlgmr.msra.gmra.mxu0 %vm48_vm0, %v22_v5 }
   0xb   :  { %574 = vmatprep.mubr.msk.f32.mxu0 %vm48_vm0, %v23_v6  ;;  %v509_v6 = vld [vmem:[%s803_s4] ss:$0 sm:$0xff] }
   0xe   :  { %575 = vmatmul.mubr.msk.f32.gmra.mxu0 %vm48_vm0, %v24_v7 }
   0xf   :  { %577 = vmatprep.mubr.msk.f32.mxu0 %vm48_vm0, %v25_v8 }
  0x12   :  { %578 = vmatmul.mubr.msk.f32.gmra.mxu0 %vm48_vm0, %v26_v9 }
  0x13   :  { %580 = vmatprep.mubr.msk.f32.mxu0 %vm48_vm0, %v27_v10 }
  0x16   :  { %581 = vmatmul.mubr.msk.f32.gmra.mxu0 %vm48_vm0, %v28_v11 }
  0x17   :  { %583 = vmatprep.mubr.msk.f32.mxu0 %vm48_vm0, %v29_v12 }
  0x1a   :  { %584 = vmatmul.mubr.msk.f32.gmra.mxu0 %vm48_vm0, %v30_v13 }
  0x1b   :  { %586 = vmatprep.mubr.msk.f32.mxu0 %vm48_vm0, %v31_v14 }
  0x1e   :  { %587 = vmatmul.mubr.msk.f32.gmra.mxu0 %vm48_vm0, %v32_v15 }
  0x1f   :  { %589 = vmatprep.mubr.msk.f32.mxu0 %vm48_vm0, %v33_v16 }
  0x22   :  { %590 = vmatmul.mubr.msk.f32.gmra.mxu0 %vm48_vm0, %v34_v17 }
  0x23   :  { %592 = vmatprep.mubr.msk.f32.mxu0 %vm48_vm0, %v35_v18 }
  0x26   :  { %593 = vmatmul.mubr.msk.f32.gmra.mxu0 %vm48_vm0, %v36_v19 }
  0xca   :  { %v573_v22 = vpop.f32.mrf.mxu0 }
  0xcb   :  { %v169_v23 = vadd.f32 %v573_v22, %v492_v21 }
  0xcc   :  { %v163_v24 = vpop.f32.mrf.mxu0 }
  0xcd   :  { %v164_v25 = vadd.f32 %v492_v21, %v163_v24  ;;  %v243_v28 = vmax.f32 %v169_v23, 0.0 }
  0xce   :  { %v576_v26 = vpop.f32.mrf.mxu0 }
  0xcf   :  { %v242_v27 = vmax.f32 %v164_v25, 0.0  ;;  %v179_v29 = vadd.f32 %v576_v26, %v492_v21 }
  0xd0   :  { %v173_v30 = vpop.f32.mrf.mxu0 }
  0xd1   :  { %v174_v31 = vadd.f32 %v492_v21, %v173_v30  ;;  %597 = vmatprep.mubr.msk.f32.mxu1 %vm266_vm1, %v242_v27  ;;  %v245_v34 = vmax.f32 %v179_v29, 0.0 }
  0xd2   :  { %v579_v32 = vpop.f32.mrf.mxu0  ;;  %598 = vmatmul.mubr.msk.f32.vlgmr.msra.gmra.mxu1 %vm266_vm1, %v243_v28 }
  0xd3   :  { %v244_v33 = vmax.f32 %v174_v31, 0.0  ;;  %v189_v35 = vadd.f32 %v579_v32, %v492_v21 }
  0xd4   :  { %v183_v36 = vpop.f32.mrf.mxu0 }
  0xd5   :  { %v184_v37 = vadd.f32 %v492_v21, %v183_v36  ;;  %600 = vmatprep.mubr.msk.f32.mxu1 %vm266_vm1, %v244_v33  ;;  %v247_v40 = vmax.f32 %v189_v35, 0.0 }
  0xd6   :  { %v582_v38 = vpop.f32.mrf.mxu0  ;;  %601 = vmatmul.mubr.msk.f32.gmra.mxu1 %vm266_vm1, %v245_v34 }
  0xd7   :  { %v246_v39 = vmax.f32 %v184_v37, 0.0  ;;  %v199_v41 = vadd.f32 %v582_v38, %v492_v21 }
  0xd8   :  { %v193_v42 = vpop.f32.mrf.mxu0 }
  0xd9   :  { %v194_v43 = vadd.f32 %v492_v21, %v193_v42  ;;  %603 = vmatprep.mubr.msk.f32.mxu1 %vm266_vm1, %v246_v39  ;;  %v249_v46 = vmax.f32 %v199_v41, 0.0 }
  0xda   :  { %v585_v44 = vpop.f32.mrf.mxu0  ;;  %604 = vmatmul.mubr.msk.f32.gmra.mxu1 %vm266_vm1, %v247_v40 }
  0xdb   :  { %v248_v45 = vmax.f32 %v194_v43, 0.0  ;;  %v209_v47 = vadd.f32 %v585_v44, %v492_v21 }
  0xdc   :  { %v203_v48 = vpop.f32.mrf.mxu0 }
  0xdd   :  { %v204_v49 = vadd.f32 %v492_v21, %v203_v48  ;;  %606 = vmatprep.mubr.msk.f32.mxu1 %vm266_vm1, %v248_v45  ;;  %v251_v52 = vmax.f32 %v209_v47, 0.0 }
  0xde   :  { %v588_v50 = vpop.f32.mrf.mxu0  ;;  %607 = vmatmul.mubr.msk.f32.gmra.mxu1 %vm266_vm1, %v249_v46 }
  0xdf   :  { %v250_v51 = vmax.f32 %v204_v49, 0.0  ;;  %v219_v53 = vadd.f32 %v588_v50, %v492_v21 }
  0xe0   :  { %v213_v54 = vpop.f32.mrf.mxu0 }
  0xe1   :  { %v214_v55 = vadd.f32 %v492_v21, %v213_v54  ;;  %609 = vmatprep.mubr.msk.f32.mxu1 %vm266_vm1, %v250_v51  ;;  %v253_v58 = vmax.f32 %v219_v53, 0.0 }
  0xe2   :  { %v591_v56 = vpop.f32.mrf.mxu0  ;;  %610 = vmatmul.mubr.msk.f32.gmra.mxu1 %vm266_vm1, %v251_v52 }
  0xe3   :  { %v252_v57 = vmax.f32 %v214_v55, 0.0  ;;  %v229_v59 = vadd.f32 %v591_v56, %v492_v21 }
  0xe4   :  { %v223_v60 = vpop.f32.mrf.mxu0 }
  0xe5   :  { %v224_v61 = vadd.f32 %v492_v21, %v223_v60  ;;  %612 = vmatprep.mubr.msk.f32.mxu1 %vm266_vm1, %v252_v57  ;;  %v255_v0 = vmax.f32 %v229_v59, 0.0 }
  0xe6   :  { %v594_v62 = vpop.f32.mrf.mxu0  ;;  %613 = vmatmul.mubr.msk.f32.gmra.mxu1 %vm266_vm1, %v253_v58 }
  0xe7   :  { %v254_v63 = vmax.f32 %v224_v61, 0.0  ;;  %v239_v1 = vadd.f32 %v594_v62, %v492_v21 }
  0xe8   :  { %v233_v2 = vpop.f32.mrf.mxu0 }
  0xe9   :  { %v234_v3 = vadd.f32 %v492_v21, %v233_v2  ;;  %615 = vmatprep.mubr.msk.f32.mxu1 %vm266_vm1, %v254_v63  ;;  %v257_v5 = vmax.f32 %v239_v1, 0.0 }
  0xea   :  { %616 = vmatmul.mubr.msk.f32.gmra.mxu1 %vm266_vm1, %v255_v0 }
  0xeb   :  { %v256_v4 = vmax.f32 %v234_v3, 0.0 }
  0xed   :  { %618 = vmatprep.mubr.msk.f32.mxu1 %vm266_vm1, %v256_v4 }
  0xee   :  { %619 = vmatmul.mubr.msk.f32.gmra.mxu1 %vm266_vm1, %v257_v5 }
 0x192   :  { %v599_v7 = vpop.f32.mrf.mxu1 }
 0x193   :  { %v387_v8 = vadd.f32 %v599_v7, %v509_v6 }
 0x194   :  { %v381_v9 = vpop.f32.mrf.mxu1 }
 0x195   :  { %461 = vst.msk [vmem:[#allocation2 + $0x8] sm:$0xff] %vm48_vm0, %v387_v8  ;;  %v382_v10 = vadd.f32 %v509_v6, %v381_v9 }
 0x196   :  { %v602_v11 = vpop.f32.mrf.mxu1 }
 0x197   :  { %460 = vst.msk [vmem:[#allocation2] sm:$0xff] %vm48_vm0, %v382_v10  ;;  %v397_v12 = vadd.f32 %v602_v11, %v509_v6 }
 0x198   :  { %v391_v13 = vpop.f32.mrf.mxu1 }
 0x199   :  { %463 = vst.msk [vmem:[#allocation2 + $0x18] sm:$0xff] %vm48_vm0, %v397_v12  ;;  %v392_v14 = vadd.f32 %v509_v6, %v391_v13 }
 0x19a   :  { %v605_v15 = vpop.f32.mrf.mxu1 }
 0x19b   :  { %462 = vst.msk [vmem:[#allocation2 + $0x10] sm:$0xff] %vm48_vm0, %v392_v14  ;;  %v407_v16 = vadd.f32 %v605_v15, %v509_v6 }
 0x19c   :  { %v401_v17 = vpop.f32.mrf.mxu1 }
 0x19d   :  { %465 = vst.msk [vmem:[#allocation2 + $0x28] sm:$0xff] %vm48_vm0, %v407_v16  ;;  %v402_v18 = vadd.f32 %v509_v6, %v401_v17 }
 0x19e   :  { %v608_v19 = vpop.f32.mrf.mxu1 }
 0x19f   :  { %464 = vst.msk [vmem:[#allocation2 + $0x20] sm:$0xff] %vm48_vm0, %v402_v18  ;;  %v417_v20 = vadd.f32 %v608_v19, %v509_v6 }
 0x1a0   :  { %v411_v21 = vpop.f32.mrf.mxu1 }
 0x1a1   :  { %467 = vst.msk [vmem:[#allocation2 + $0x38] sm:$0xff] %vm48_vm0, %v417_v20  ;;  %v412_v22 = vadd.f32 %v509_v6, %v411_v21 }
 0x1a2   :  { %v611_v23 = vpop.f32.mrf.mxu1 }
 0x1a3   :  { %466 = vst.msk [vmem:[#allocation2 + $0x30] sm:$0xff] %vm48_vm0, %v412_v22  ;;  %v427_v24 = vadd.f32 %v611_v23, %v509_v6 }
 0x1a4   :  { %v421_v25 = vpop.f32.mrf.mxu1 }
 0x1a5   :  { %469 = vst.msk [vmem:[#allocation2 + $0x48] sm:$0xff] %vm48_vm0, %v427_v24  ;;  %v422_v26 = vadd.f32 %v509_v6, %v421_v25 }
 0x1a6   :  { %v614_v27 = vpop.f32.mrf.mxu1 }
 0x1a7   :  { %468 = vst.msk [vmem:[#allocation2 + $0x40] sm:$0xff] %vm48_vm0, %v422_v26  ;;  %v437_v28 = vadd.f32 %v614_v27, %v509_v6 }
 0x1a8   :  { %v431_v29 = vpop.f32.mrf.mxu1 }
 0x1a9   :  { %471 = vst.msk [vmem:[#allocation2 + $0x58] sm:$0xff] %vm48_vm0, %v437_v28  ;;  %v432_v30 = vadd.f32 %v509_v6, %v431_v29 }
 0x1aa   :  { %v617_v31 = vpop.f32.mrf.mxu1 }
 0x1ab   :  { %470 = vst.msk [vmem:[#allocation2 + $0x50] sm:$0xff] %vm48_vm0, %v432_v30  ;;  %v447_v32 = vadd.f32 %v617_v31, %v509_v6 }
 0x1ac   :  { %v441_v33 = vpop.f32.mrf.mxu1 }
 0x1ad   :  { %473 = vst.msk [vmem:[#allocation2 + $0x68] sm:$0xff] %vm48_vm0, %v447_v32  ;;  %v442_v34 = vadd.f32 %v509_v6, %v441_v33 }
 0x1ae   :  { %v620_v35 = vpop.f32.mrf.mxu1 }
 0x1af   :  { %472 = vst.msk [vmem:[#allocation2 + $0x60] sm:$0xff] %vm48_vm0, %v442_v34  ;;  %v457_v36 = vadd.f32 %v620_v35, %v509_v6 }
 0x1b0   :  { %v451_v37 = vpop.f32.mrf.mxu1 }
 0x1b1   :  { %475 = vst.msk [vmem:[#allocation2 + $0x78] sm:$0xff] %vm48_vm0, %v457_v36  ;;  %v452_v38 = vadd.f32 %v509_v6, %v451_v37 }
 0x1b3   :  { %474 = vst.msk [vmem:[#allocation2 + $0x70] sm:$0xff] %vm48_vm0, %v452_v38 }
 0x1b4   :  { %480 = vsyncadd [#allocation3], 1792  ;;  %s646_s3 = smov [#allocation2]  }
 0x1b5   :  { %s481_s4 = sshll.u32 %s646_s3, 4  ;;  %s482_s4 = int_to_ptr.vmem [resolvable:$true] %s481_s4 }
 0x1b6   :  { %s624_s10 = scalar_lea.vmem %s482_s4, 256  ;;  %s628_s11 = scalar_lea.vmem %s482_s4, 2048 }
 0x1b7   :  { %p625_p0 = scmp.ne.s32.totalorder %s482_s4, %s624_s10  ;;  %p629_p1 = scmp.lt.s32.totalorder %s482_s4, %s482_s4 }
 0x1b8   :  { %p630_p2 = scmp.lt.s32.totalorder %s628_s11, %s624_s10 }
 0x1ba   :  { %p631_p3 = por %p630_p2, %p629_p1 }
 0x1bc   :  { %p632_p4 = pnand %p631_p3, %p625_p0 }
 0x1be   :  { %635 = shalt.err (!%p632_p4)
}
 0x1bf   :  { %s647_s12 = smov 128   ;;  %s648_s13 = smov 8  }
 0x1c0   :  { %487 = dma.vmem_to_hbm [thread:$0]  %s482_s4, 256, %s804_s5, [#allocation3], %s647_s12, %s647_s12, %s648_s13  }
 0x1c1   :  { %644 = dma.done.wait [#allocation3], 2048  }
 0x1c2   :  { %645 = vsyncadd [#allocation3], 4294965248 }
 0x1c3   :  { %491 = vsyncpa [#allocation3], 1 }

</bundles_post_ra>
